<compile_context>
chip_gen: v7x
topology: tpu7x:2x2x1
jax: 0.10.0
libtpu: 0.0.40
codegen_flags: <defaults>
</compile_context>

<pallas_src>
import jax
import jax.numpy as jnp
from jax import lax
from jax.experimental import pallas as pl
from jax.experimental.pallas import tpu as pltpu

EPS = 1e-10

# ~2 MiB per input tile -> 2 in + 2 out double-buffers ~= 8 MiB of VMEM.
_TILE_BYTE_BUDGET = 2 * 1024 * 1024


def _l2norm_kernel(x_ref, o_ref):
    # x_ref / o_ref: (TM, D) tile in VMEM.  Rows are independent; garbage rows
    # in a ragged final tile only affect outputs that Pallas clips away.
    x = x_ref[...].astype(jnp.float32)
    ssq = jnp.sum(x * x, axis=-1, keepdims=True)      # (TM, 1)  lane reduction
    inv = lax.rsqrt(ssq + EPS)                        # EUP transcendental
    o_ref[...] = (x * inv).astype(o_ref.dtype)        # plain VPU multiply


def _sublane_multiple(dtype) -> int:
    # Minimum sublane tile for packed dtypes: f32 -> 8, bf16 -> 16, int8/fp8 -> 32.
    itemsize = jnp.dtype(dtype).itemsize
    return max(8, 32 // max(itemsize, 1))


def _round_up(n: int, m: int) -> int:
    return ((n + m - 1) // m) * m


def _pick_tile_rows(B: int, D: int, dtype) -> int:
    """Row-tile size: byte-budgeted, sublane-aligned, and >=2 grid steps when possible."""
    sub = _sublane_multiple(dtype)
    itemsize = jnp.dtype(dtype).itemsize

    # Rows that fit the byte budget (bf16 automatically gets 2x the rows of f32).
    tm = max(sub, _TILE_BYTE_BUDGET // max(D * itemsize, 1))
    # Don't exceed the (sublane-rounded) batch — no point computing garbage rows.
    tm = min(tm, _round_up(B, sub))
    tm = _round_up(tm, sub)

    # Guarantee >= 2 grid steps when the batch is big enough so that
    # dimension_semantics=("parallel",) can shard across v7x's 2 TensorCores.
    # (No-op on v5e/v6e which have a single TC.)
    if B >= 2 * sub and pl.cdiv(B, tm) < 2:
        tm = _round_up(pl.cdiv(B, 2), sub)

    return tm


def l2norm(x):
    """L2-normalize each row of x (shape (B, D)), matching the PyTorch L2Norm module."""
    B, D = x.shape
    tm = _pick_tile_rows(B, D, x.dtype)
    grid = (pl.cdiv(B, tm),)
    itemsize = jnp.dtype(x.dtype).itemsize

    return pl.pallas_call(
        _l2norm_kernel,
        out_shape=jax.ShapeDtypeStruct((B, D), x.dtype),
        grid_spec=pltpu.PrefetchScalarGridSpec(
            num_scalar_prefetch=0,
            grid=grid,
            in_specs=[pl.BlockSpec((tm, D), lambda i: (i, 0))],
            out_specs=pl.BlockSpec((tm, D), lambda i: (i, 0)),
        ),
        compiler_params=pltpu.CompilerParams(
            dimension_semantics=("parallel",),
        ),
        cost_estimate=pl.CostEstimate(
            flops=3 * B * D,                 # mul + reduce-add + scale
            transcendentals=B,               # one rsqrt per row
            bytes_accessed=2 * B * D * itemsize,
        ),
    )(x)


def l2norm_ref(x):
    # Pure-JAX reference matching PyTorch exactly (sqrt + divide).
    norm = jnp.sqrt(jnp.sum(x * x, axis=1) + EPS)
    return x / norm[:, None]


if __name__ == "__main__":
    key = jax.random.PRNGKey(0)

    # HardNet descriptors: (batch, 128). Small batch exercises the single-tile path.
    B, D = 8, 128
    x = jax.random.normal(key, (B, D), dtype=jnp.float32)

    out = jax.block_until_ready(l2norm(x))
    ref = l2norm_ref(x)
    assert out.shape == (B, D) and out.dtype == x.dtype
    assert jnp.allclose(out, ref, atol=1e-5, rtol=1e-5)

    # Larger, non-divisible batch exercises the ragged final block and the
    # >=2-grid-step (dual-TensorCore) path.
    B2 = 1000
    x2 = jax.random.normal(jax.random.PRNGKey(1), (B2, D), dtype=jnp.float32)
    out2 = jax.block_until_ready(l2norm(x2))
    ref2 = l2norm_ref(x2)
    assert out2.shape == (B2, D)
    assert jnp.allclose(out2, ref2, atol=1e-5, rtol=1e-5)

    print("KERNEL_OK")
</pallas_src>

<mosaic_0001>
module attributes {stable_mosaic.version = 11 : i64} {
  func.func @_l2norm_kernel(%arg0: i32, %arg1: memref<8x128xf32, #tpu.memory_space<vmem>>, %arg2: memref<8x128xf32, #tpu.memory_space<vmem>>) attributes {dimension_semantics = [#tpu.dimension_semantics<parallel>], iteration_bounds = array<i64: 1>, scalar_prefetch = 0 : i64, scratch_operands = 0 : i64, tpu.core_type = #tpu.core_type<tc>, window_params = [{transform_indices = @transform_0, window_bounds = array<i64: 8, 128>}, {transform_indices = @transform_1, window_bounds = array<i64: 8, 128>}]} {
    %c0 = arith.constant 0 : index
    %c0_0 = arith.constant 0 : index
    %0 = vector.load %arg1[%c0, %c0_0] : memref<8x128xf32, #tpu.memory_space<vmem>>, vector<8x128xf32>
    %1 = arith.mulf %0, %0 : vector<8x128xf32>
    %cst = arith.constant dense<0.000000e+00> : vector<8xf32>
    %2 = vector.multi_reduction <add>, %1, %cst [1] : vector<8x128xf32> to vector<8xf32>
    %3 = vector.shape_cast %2 : vector<8xf32> to vector<8x1xf32>
    %cst_1 = arith.constant 1.000000e-10 : f32
    %4 = vector.broadcast %cst_1 : f32 to vector<8x1xf32>
    %5 = arith.addf %3, %4 : vector<8x1xf32>
    %6 = math.rsqrt %5 : vector<8x1xf32>
    %7 = vector.broadcast %6 : vector<8x1xf32> to vector<8x128xf32>
    %8 = arith.mulf %0, %7 : vector<8x128xf32>
    %c0_2 = arith.constant 0 : index
    %c0_3 = arith.constant 0 : index
    %9 = vector.load %arg2[%c0_2, %c0_3] : memref<8x128xf32, #tpu.memory_space<vmem>>, vector<8x128xf32>
    tpu.vector_store %arg2[%c0_2, %c0_3], %8 {strides = array<i32>} : memref<8x128xf32, #tpu.memory_space<vmem>>, vector<8x128xf32>,
    return
  }
  func.func @transform_0(%arg0: i32) -> (i32, i32) {
    %c0_i32 = arith.constant 0 : i32
    %c0_i32_0 = arith.constant 0 : i32
    return %arg0, %c0_i32 : i32, i32
  }
  func.func @transform_1(%arg0: i32) -> (i32, i32) {
    %c0_i32 = arith.constant 0 : i32
    %c0_i32_0 = arith.constant 0 : i32
    return %arg0, %c0_i32 : i32, i32
  }
}

</mosaic_0001>

<bundles_post_ra>
// kernel: tpu_custom_call.1
= control target key start
LH: loop header
LB: loop body
LE: loop exit
PB: predicated region body
PF: predicated region fallthrough
CT: control target
= control target key end

     0   :  { %6 = vsyncpa [#allocation3], 0  ;;  %s132_s0 = inlined_call_operand.hbm [shape: f32[8,128], index: 0, kind: input, shape index: {}]   ;;  %s133_s1 = inlined_call_operand.hbm [shape: f32[8,128], index: 1, kind: output, shape index: {}]  }
   0x1   :  { %7 = vsyncpa [#allocation4], 0  ;;  %s96_s6 = smov [#allocation2]   ;;  %s48_s10 = scalar_lea.hbm %s132_s0, 128 }
   0x2   :  { %s14_s7 = sshll.u32 %s96_s6, 4  ;;  %p49_p0 = scmp.ne.s32.totalorder %s132_s0, %s48_s10  ;;  %s15_s7 = int_to_ptr.vmem [resolvable:$true] %s14_s7 }
   0x3   :  { %p52_p1 = scmp.lt.u32.totalorder %s48_s10, %s132_s0 }
   0x5   :  { %p54_p2 = pnand %p52_p1, %p49_p0 }
   0x7   :  { %57 = shalt.err (!%p54_p2)
}
   0x8   :  { %s58_s15 = scalar_lea.vmem %s15_s7, 128  ;;  %p63_p4 = scmp.lt.s32.totalorder %s15_s7, %s15_s7 }
   0x9   :  { %p59_p3 = scmp.ne.s32.totalorder %s15_s7, %s58_s15  ;;  %p64_p5 = scmp.lt.s32.totalorder %s58_s15, %s58_s15 }
   0xb   :  { %p65_p6 = por %p64_p5, %p63_p4 }
   0xd   :  { %p66_p7 = pnand %p65_p6, %p59_p3 }
   0xf   :  { %69 = shalt.err (!%p66_p7)
}
  0x10   :  { %17 = dma.hbm_to_vmem [thread:$0]  %s132_s0, 128, %s15_s7, [#allocation3]  }
  0x11   :  { %92 = dma.done.wait [#allocation3], 128  }
  0x12   :  { %93 = vsyncadd [#allocation3], 4294967168  ;;  %v21_v0 = vld [vmem:[#allocation2] sm:$0xff]  ;;  %s97_s18 = smov [#allocation5]  }
  0x13   :  { %v22_v1 = vmul.f32 %v21_v0, %v21_v0  ;;  %s35_s19 = sshll.u32 %s97_s18, 4  ;;  %s36_s19 = int_to_ptr.vmem [resolvable:$true] %s35_s19 }
  0x14   :  { %s70_s20 = scalar_lea.vmem %s36_s19, 128  ;;  %p75_p9 = scmp.lt.s32.totalorder %s36_s19, %s36_s19 }
  0x15   :  { %23 = vadd.xlane.f32.xlu0 %v22_v1  ;;  %p71_p8 = scmp.ne.s32.totalorder %s36_s19, %s70_s20  ;;  %p76_p10 = scmp.lt.s32.totalorder %s70_s20, %s70_s20 }
  0x17   :  { %p77_p11 = por %p76_p10, %p75_p9 }
  0x19   :  { %p78_p12 = pnand %p77_p11, %p71_p8 }
  0xa2   :  { %v24_v2 = vpop.xlane.xlu0 %23 }
  0xa3   :  { %v25_v3 = vadd.f32 1e-10, %v24_v2 }
  0xa5   :  { %46 = vrsqrt.f32 %v25_v3 }
  0xaf   :  { %v47_v4 = vpop.eup %46 }
  0xb0   :  { %v27_v5 = vmul.f32 %v47_v4, %v21_v0 }
  0xb2   :  { %28 = vst [vmem:[#allocation5] sm:$0xff] %v27_v5 }
  0xb3   :  { %81 = shalt.err (!%p78_p12)
}
  0xb4   :  { %s82_s22 = scalar_lea.hbm %s133_s1, 128 }
  0xb5   :  { %p83_p13 = scmp.ne.s32.totalorder %s133_s1, %s82_s22  ;;  %p86_p0 = scmp.lt.u32.totalorder %s82_s22, %s133_s1 }
  0xb7   :  { %p88_p1 = pnand %p86_p0, %p83_p13 }
  0xb9   :  { %91 = shalt.err (!%p88_p1)
}
  0xba   :  { %38 = dma.vmem_to_hbm [thread:$0]  %s36_s19, 128, %s133_s1, [#allocation4]  }
  0xbb   :  { %94 = dma.done.wait [#allocation4], 128  }
  0xbc   :  { %95 = vsyncadd [#allocation4], 4294967168 }
  0xbd   :  { %42 = vsyncpa [#allocation3], 1 }
  0xbe   :  { %43 = vsyncpa [#allocation4], 1 }

</bundles_post_ra>
